<compile_context>
chip_gen: v7x
topology: tpu7x:2x2x1
jax: 0.10.0
libtpu: 0.0.40
codegen_flags: <defaults>
</compile_context>

<pallas_src>
import functools

import jax
import jax.numpy as jnp
from jax.experimental import pallas as pl
from jax.experimental.pallas import tpu as pltpu


def _round_up(x, m):
    return (x + m - 1) // m * m


def _gate_compute_dtype():
    """bf16 gate nonlinearities on v6e/v7x (native bf16 EUP); f32 on v5e/older."""
    try:
        kind = jax.devices()[0].device_kind.lower()
    except Exception:
        return jnp.float32
    if ("v6" in kind) or ("v7" in kind) or ("7x" in kind):
        return jnp.bfloat16
    return jnp.float32


def _apply_gates(z, c_prev_f32, h_dim, gate_dtype):
    """Shared gate math (kernel + reference). z:[.,4H] in i|f|o|g order.

    Gate nonlinearities run in `gate_dtype`; the c/h state update stays f32.
    sigmoid(x) = 0.5*(tanh(0.5*x)+1): one EUP tanh instead of exp + reciprocal.
    """
    zg = z.astype(gate_dtype)

    def sig(v):
        return 0.5 * (jnp.tanh(0.5 * v) + 1.0)

    i = sig(zg[:, 0 * h_dim:1 * h_dim]).astype(jnp.float32)
    f = sig(zg[:, 1 * h_dim:2 * h_dim]).astype(jnp.float32)
    o = sig(zg[:, 2 * h_dim:3 * h_dim]).astype(jnp.float32)
    g = jnp.tanh(zg[:, 3 * h_dim:4 * h_dim]).astype(jnp.float32)

    c = f * c_prev_f32 + i * g
    h = o * jnp.tanh(c)          # state update (incl. tanh(c)) kept in f32
    return h, c


def _social_lstm_kernel(x_ref, h_ref, c_ref, s_ref,
                        wx_ref, wh_ref, ws_ref, b_ref,
                        h_out_ref, c_out_ref, *, gate_dtype):
    """x_ref:[TB,I]  h_ref/c_ref:[TB,H]  s_ref:[TB,S]
    wx_ref:[I,4H]  wh_ref:[H,4H]  ws_ref:[S,4H]  b_ref:[1,4H]  (i|f|o|g)."""
    H = c_ref.shape[-1]
    mm = wx_ref.dtype  # bf16 MXU operands

    # Fused gate pre-activations z = [i|f|o|g] : [TB, 4H], f32 MXU accumulation.
    z = jnp.dot(x_ref[...].astype(mm), wx_ref[...],
                preferred_element_type=jnp.float32)
    z = z + jnp.dot(h_ref[...].astype(mm), wh_ref[...],
                    preferred_element_type=jnp.float32)
    z = z + jnp.dot(s_ref[...].astype(mm), ws_ref[...],
                    preferred_element_type=jnp.float32)
    z = z + b_ref[...].astype(jnp.float32)

    h, c = _apply_gates(z, c_ref[...].astype(jnp.float32), H, gate_dtype)

    h_out_ref[...] = h.astype(h_out_ref.dtype)
    c_out_ref[...] = c.astype(c_out_ref.dtype)


def _choose_batch_tile(B, input_dim, h_dim, social_dim,
                       x_itemsize, h_itemsize, vmem_budget_bytes=28 << 20):
    """Batch tile from a VMEM budget aligned with the 32 MiB vmem limit."""
    # Resident weights (bf16) + bias (f32).
    w_bytes = 2 * (input_dim + h_dim + social_dim) * 4 * h_dim + 4 * 4 * h_dim
    # Per batch-row bytes: double-buffered inputs/outputs + f32 intermediates.
    in_row = 2 * (x_itemsize * (input_dim + social_dim)     # x, social
                  + h_itemsize * h_dim                      # h_prev
                  + 4 * h_dim)                              # c_prev (f32)
    out_row = 2 * (h_itemsize * h_dim + 4 * h_dim)          # h, c outputs
    tmp_row = 3 * (4 * 4 * h_dim)                           # z + gate temps (f32)
    per_row = in_row + out_row + tmp_row
    avail = max(vmem_budget_bytes - w_bytes, 1 << 20)
    tb = int(avail // per_row) // 8 * 8
    # Cap at 1024; keep >= 2 grid steps so "parallel" can use both v7x TCs.
    two_step = _round_up(pl.cdiv(B, 2), 8)
    tb = max(8, min(tb, 1024, two_step))
    return tb


def social_lstm_cell(x, h_prev, c_prev, social_tensor, params):
    """Pallas forward of SocialLSTMCell.

    Args:
      x:             [B, input_dim]    (f32 or bf16 — producer's dtype)
      h_prev:        [B, h_dim]        (f32 or bf16)
      c_prev:        [B, h_dim]        (f32 recommended)
      social_tensor: [B, social_dim]   (f32 or bf16)
      params: dict with
        'w_x': [input_dim,  4*h_dim]  bf16  (gate order i|f|o|g)
        'w_h': [h_dim,      4*h_dim]  bf16
        'w_s': [social_dim, 4*h_dim]  bf16
        'b'  : [1,          4*h_dim]  f32

    Returns:
      (h, c): h has h_prev.dtype, c has c_prev.dtype, each [B, h_dim].
    """
    B, H = h_prev.shape
    I = x.shape[1]
    S = social_tensor.shape[1]
    w_x, w_h, w_s, b = params["w_x"], params["w_h"], params["w_s"], params["b"]

    tb = _choose_batch_tile(B, I, H, S, x.dtype.itemsize, h_prev.dtype.itemsize)
    # No jnp.pad: trailing partial block (if tb does not divide B) has its OOB
    # rows read as garbage and its OOB writes dropped; rows are independent.
    grid = (pl.cdiv(B, tb),)

    gate_dtype = _gate_compute_dtype()

    def batch_map(i):
        return (i, 0)

    def const_map(i):
        return (0, 0)  # weights/bias stay resident in VMEM (DMA'd once)

    # NOTE: callers that donate h_prev/c_prev buffers could also pass
    # input_output_aliases={1: 0, 2: 1} for in-place state update.
    h_out, c_out = pl.pallas_call(
        functools.partial(_social_lstm_kernel, gate_dtype=gate_dtype),
        grid=grid,
        in_specs=[
            pl.BlockSpec((tb, I), batch_map),
            pl.BlockSpec((tb, H), batch_map),
            pl.BlockSpec((tb, H), batch_map),
            pl.BlockSpec((tb, S), batch_map),
            pl.BlockSpec((I, 4 * H), const_map),
            pl.BlockSpec((H, 4 * H), const_map),
            pl.BlockSpec((S, 4 * H), const_map),
            pl.BlockSpec((1, 4 * H), const_map),
        ],
        out_specs=(
            pl.BlockSpec((tb, H), batch_map),
            pl.BlockSpec((tb, H), batch_map),
        ),
        out_shape=(
            jax.ShapeDtypeStruct((B, H), h_prev.dtype),
            jax.ShapeDtypeStruct((B, H), c_prev.dtype),
        ),
        compiler_params=pltpu.CompilerParams(
            dimension_semantics=("parallel",),   # shard batch over TCs (v7x)
            vmem_limit_bytes=32 * 1024 * 1024,
        ),
    )(x, h_prev, c_prev, social_tensor, w_x, w_h, w_s, b)

    return h_out, c_out


def init_params(key, input_dim, h_dim, social_dim, matmul_dtype=jnp.bfloat16):
    """Mimics nn.Linear U(-1/sqrt(fan_in), 1/sqrt(fan_in)) init for the four
    gate layers, stacked in gate order i|f|o|g and split per input stream."""
    fan_in = input_dim + h_dim + social_dim
    bound = 1.0 / (fan_in ** 0.5)
    kw, kb = jax.random.split(key)
    w = jax.random.uniform(kw, (fan_in, 4 * h_dim), jnp.float32, -bound, bound)
    b = jax.random.uniform(kb, (4 * h_dim,), jnp.float32, -bound, bound)
    params = {
        "w_x": w[:input_dim].astype(matmul_dtype),
        "w_h": w[input_dim:input_dim + h_dim].astype(matmul_dtype),
        "w_s": w[input_dim + h_dim:].astype(matmul_dtype),
        "b": b.reshape(1, -1),
    }
    return params, (w, b)


def _reference_matched(x, h_prev, c_prev, social, params, h_dim, gate_dtype):
    """Pure-JAX reference using the SAME bf16-operand / gate-dtype math."""
    mm = params["w_x"].dtype
    z = (jnp.dot(x.astype(mm), params["w_x"], preferred_element_type=jnp.float32)
         + jnp.dot(h_prev.astype(mm), params["w_h"], preferred_element_type=jnp.float32)
         + jnp.dot(social.astype(mm), params["w_s"], preferred_element_type=jnp.float32)
         + params["b"])
    return _apply_gates(z, c_prev.astype(jnp.float32), h_dim, gate_dtype)


def _reference_f32(x, h_prev, c_prev, social, w, b, h_dim):
    """Full-f32 reference matching the PyTorch forward semantics."""
    combined = jnp.concatenate([x.astype(jnp.float32),
                                h_prev.astype(jnp.float32),
                                social.astype(jnp.float32)], axis=1)
    z = combined @ w + b
    i = jax.nn.sigmoid(z[:, 0 * h_dim:1 * h_dim])
    f = jax.nn.sigmoid(z[:, 1 * h_dim:2 * h_dim])
    o = jax.nn.sigmoid(z[:, 2 * h_dim:3 * h_dim])
    g = jnp.tanh(z[:, 3 * h_dim:4 * h_dim])
    c = f * c_prev.astype(jnp.float32) + i * g
    h = o * jnp.tanh(c)
    return h, c


if __name__ == "__main__":
    # h_dim = 128 -> lane-dense gate slices and unmasked h/c output stores.
    input_dim, h_dim, social_dim = 8, 128, 16
    batch = 64   # small demo: tb=32 -> grid of 2 tiles (megacore-splittable)

    key = jax.random.PRNGKey(0)
    k_x, k_h, k_c, k_s, k_p = jax.random.split(key, 5)

    # bf16 activations at the boundary (as a bf16-activation model would
    # produce them — no wrapper-side astype); cell state stays f32.
    x = jax.random.normal(k_x, (batch, input_dim), jnp.bfloat16)
    h_prev = jax.random.normal(k_h, (batch, h_dim), jnp.bfloat16)
    c_prev = jax.random.normal(k_c, (batch, h_dim), jnp.float32)
    social = jax.random.normal(k_s, (batch, social_dim), jnp.bfloat16)
    params, (w_full, b_full) = init_params(k_p, input_dim, h_dim, social_dim)

    fwd = jax.jit(social_lstm_cell)
    h, c = fwd(x, h_prev, c_prev, social, params)
    jax.block_until_ready((h, c))

    assert h.shape == (batch, h_dim) and c.shape == (batch, h_dim)
    assert h.dtype == h_prev.dtype and c.dtype == c_prev.dtype

    # Tight check vs. a reference using identical matmul/gate-dtype math
    # (remaining diff is essentially the bf16 quantization of the h output).
    h_m, c_m = _reference_matched(x, h_prev, c_prev, social, params,
                                  h_dim, _gate_compute_dtype())
    h_f32 = h.astype(jnp.float32)
    assert jnp.allclose(h_f32, h_m, atol=1e-2), float(jnp.max(jnp.abs(h_f32 - h_m)))
    assert jnp.allclose(c, c_m, atol=2e-3), float(jnp.max(jnp.abs(c - c_m)))

    # Looser sanity check vs. the full-f32 PyTorch-equivalent forward
    # (bf16 weights + bf16 activations + bf16 gate path on v6e/v7x).
    h_f, c_f = _reference_f32(x, h_prev, c_prev, social, w_full, b_full, h_dim)
    assert jnp.allclose(h_f32, h_f, atol=2e-1), float(jnp.max(jnp.abs(h_f32 - h_f)))
    assert jnp.allclose(c, c_f, atol=2e-1), float(jnp.max(jnp.abs(c - c_f)))

    print("KERNEL_OK")
</pallas_src>

<mosaic_0001>
module attributes {stable_mosaic.version = 11 : i64} {
  func.func @_social_lstm_kernel(%arg0: i32, %arg1: memref<32x8xbf16, #tpu.memory_space<vmem>>, %arg2: memref<32x128xbf16, #tpu.memory_space<vmem>>, %arg3: memref<32x128xf32, #tpu.memory_space<vmem>>, %arg4: memref<32x16xbf16, #tpu.memory_space<vmem>>, %arg5: memref<8x512xbf16, #tpu.memory_space<vmem>>, %arg6: memref<128x512xbf16, #tpu.memory_space<vmem>>, %arg7: memref<16x512xbf16, #tpu.memory_space<vmem>>, %arg8: memref<1x512xf32, #tpu.memory_space<vmem>>, %arg9: memref<32x128xbf16, #tpu.memory_space<vmem>>, %arg10: memref<32x128xf32, #tpu.memory_space<vmem>>) attributes {dimension_semantics = [#tpu.dimension_semantics<parallel>], iteration_bounds = array<i64: 2>, scalar_prefetch = 0 : i64, scratch_operands = 0 : i64, tpu.core_type = #tpu.core_type<tc>, window_params = [{transform_indices = @transform_0, window_bounds = array<i64: 32, 8>}, {transform_indices = @transform_1, window_bounds = array<i64: 32, 128>}, {transform_indices = @transform_2, window_bounds = array<i64: 32, 128>}, {transform_indices = @transform_3, window_bounds = array<i64: 32, 16>}, {pipeline_mode = #tpu.pipeline_mode<synchronous>, transform_indices = @transform_4, window_bounds = array<i64: 8, 512>}, {pipeline_mode = #tpu.pipeline_mode<synchronous>, transform_indices = @transform_5, window_bounds = array<i64: 128, 512>}, {pipeline_mode = #tpu.pipeline_mode<synchronous>, transform_indices = @transform_6, window_bounds = array<i64: 16, 512>}, {pipeline_mode = #tpu.pipeline_mode<synchronous>, transform_indices = @transform_7, window_bounds = array<i64: 1, 512>}, {transform_indices = @transform_8, window_bounds = array<i64: 32, 128>}, {transform_indices = @transform_9, window_bounds = array<i64: 32, 128>}]} {
    %c0 = arith.constant 0 : index
    %c0_0 = arith.constant 0 : index
    %0 = vector.load %arg1[%c0, %c0_0] : memref<32x8xbf16, #tpu.memory_space<vmem>>, vector<32x8xbf16>
    %c0_1 = arith.constant 0 : index
    %c0_2 = arith.constant 0 : index
    %1 = vector.load %arg5[%c0_1, %c0_2] : memref<8x512xbf16, #tpu.memory_space<vmem>>, vector<8x512xbf16>
    %cst = arith.constant dense<0.000000e+00> : vector<32x512xf32>
    %2 = tpu.matmul %0, %1, %cst {dimension_numbers = #tpu.dot_dimension_numbers<[1], [0], [0], [1], [0, 0, 1, 1], [], []>} : vector<32x8xbf16>, vector<8x512xbf16>, vector<32x512xf32> -> vector<32x512xf32>
    %c0_3 = arith.constant 0 : index
    %c0_4 = arith.constant 0 : index
    %3 = vector.load %arg2[%c0_3, %c0_4] : memref<32x128xbf16, #tpu.memory_space<vmem>>, vector<32x128xbf16>
    %c0_5 = arith.constant 0 : index
    %c0_6 = arith.constant 0 : index
    %4 = vector.load %arg6[%c0_5, %c0_6] : memref<128x512xbf16, #tpu.memory_space<vmem>>, vector<128x512xbf16>
    %cst_7 = arith.constant dense<0.000000e+00> : vector<32x512xf32>
    %5 = tpu.matmul %3, %4, %cst_7 {dimension_numbers = #tpu.dot_dimension_numbers<[1], [0], [0], [1], [0, 0, 1, 1], [], []>} : vector<32x128xbf16>, vector<128x512xbf16>, vector<32x512xf32> -> vector<32x512xf32>
    %6 = arith.addf %2, %5 : vector<32x512xf32>
    %c0_8 = arith.constant 0 : index
    %c0_9 = arith.constant 0 : index
    %7 = vector.load %arg4[%c0_8, %c0_9] : memref<32x16xbf16, #tpu.memory_space<vmem>>, vector<32x16xbf16>
    %c0_10 = arith.constant 0 : index
    %c0_11 = arith.constant 0 : index
    %8 = vector.load %arg7[%c0_10, %c0_11] : memref<16x512xbf16, #tpu.memory_space<vmem>>, vector<16x512xbf16>
    %cst_12 = arith.constant dense<0.000000e+00> : vector<32x512xf32>
    %9 = tpu.matmul %7, %8, %cst_12 {dimension_numbers = #tpu.dot_dimension_numbers<[1], [0], [0], [1], [0, 0, 1, 1], [], []>} : vector<32x16xbf16>, vector<16x512xbf16>, vector<32x512xf32> -> vector<32x512xf32>
    %10 = arith.addf %6, %9 : vector<32x512xf32>
    %c0_13 = arith.constant 0 : index
    %c0_14 = arith.constant 0 : index
    %11 = vector.load %arg8[%c0_13, %c0_14] : memref<1x512xf32, #tpu.memory_space<vmem>>, vector<1x512xf32>
    %12 = vector.broadcast %11 : vector<1x512xf32> to vector<32x512xf32>
    %13 = arith.addf %10, %12 : vector<32x512xf32>
    %c0_15 = arith.constant 0 : index
    %c0_16 = arith.constant 0 : index
    %14 = vector.load %arg3[%c0_15, %c0_16] : memref<32x128xf32, #tpu.memory_space<vmem>>, vector<32x128xf32>
    %15 = vector.extract_strided_slice %13 {offsets = [0, 0], sizes = [32, 128], strides = [1, 1]} : vector<32x512xf32> to vector<32x128xf32>
    %cst_17 = arith.constant 5.000000e-01 : f32
    %16 = vector.broadcast %cst_17 : f32 to vector<32x128xf32>
    %17 = arith.mulf %16, %15 : vector<32x128xf32>
    %18 = math.tanh %17 : vector<32x128xf32>
    %cst_18 = arith.constant 1.000000e+00 : f32
    %19 = vector.broadcast %cst_18 : f32 to vector<32x128xf32>
    %20 = arith.addf %18, %19 : vector<32x128xf32>
    %cst_19 = arith.constant 5.000000e-01 : f32
    %21 = vector.broadcast %cst_19 : f32 to vector<32x128xf32>
    %22 = arith.mulf %21, %20 : vector<32x128xf32>
    %23 = vector.extract_strided_slice %13 {offsets = [0, 128], sizes = [32, 128], strides = [1, 1]} : vector<32x512xf32> to vector<32x128xf32>
    %cst_20 = arith.constant 5.000000e-01 : f32
    %24 = vector.broadcast %cst_20 : f32 to vector<32x128xf32>
    %25 = arith.mulf %24, %23 : vector<32x128xf32>
    %26 = math.tanh %25 : vector<32x128xf32>
    %cst_21 = arith.constant 1.000000e+00 : f32
    %27 = vector.broadcast %cst_21 : f32 to vector<32x128xf32>
    %28 = arith.addf %26, %27 : vector<32x128xf32>
    %cst_22 = arith.constant 5.000000e-01 : f32
    %29 = vector.broadcast %cst_22 : f32 to vector<32x128xf32>
    %30 = arith.mulf %29, %28 : vector<32x128xf32>
    %31 = vector.extract_strided_slice %13 {offsets = [0, 256], sizes = [32, 128], strides = [1, 1]} : vector<32x512xf32> to vector<32x128xf32>
    %cst_23 = arith.constant 5.000000e-01 : f32
    %32 = vector.broadcast %cst_23 : f32 to vector<32x128xf32>
    %33 = arith.mulf %32, %31 : vector<32x128xf32>
    %34 = math.tanh %33 : vector<32x128xf32>
    %cst_24 = arith.constant 1.000000e+00 : f32
    %35 = vector.broadcast %cst_24 : f32 to vector<32x128xf32>
    %36 = arith.addf %34, %35 : vector<32x128xf32>
    %cst_25 = arith.constant 5.000000e-01 : f32
    %37 = vector.broadcast %cst_25 : f32 to vector<32x128xf32>
    %38 = arith.mulf %37, %36 : vector<32x128xf32>
    %39 = vector.extract_strided_slice %13 {offsets = [0, 384], sizes = [32, 128], strides = [1, 1]} : vector<32x512xf32> to vector<32x128xf32>
    %40 = math.tanh %39 : vector<32x128xf32>
    %41 = arith.mulf %30, %14 : vector<32x128xf32>
    %42 = arith.mulf %22, %40 : vector<32x128xf32>
    %43 = arith.addf %41, %42 : vector<32x128xf32>
    %44 = math.tanh %43 : vector<32x128xf32>
    %45 = arith.mulf %38, %44 : vector<32x128xf32>
    %46 = arith.truncf %45 : vector<32x128xf32> to vector<32x128xbf16>
    %c0_26 = arith.constant 0 : index
    %c0_27 = arith.constant 0 : index
    %47 = vector.load %arg9[%c0_26, %c0_27] : memref<32x128xbf16, #tpu.memory_space<vmem>>, vector<32x128xbf16>
    tpu.vector_store %arg9[%c0_26, %c0_27], %46 {strides = array<i32>} : memref<32x128xbf16, #tpu.memory_space<vmem>>, vector<32x128xbf16>,
    %c0_28 = arith.constant 0 : index
    %c0_29 = arith.constant 0 : index
    %48 = vector.load %arg10[%c0_28, %c0_29] : memref<32x128xf32, #tpu.memory_space<vmem>>, vector<32x128xf32>
    tpu.vector_store %arg10[%c0_28, %c0_29], %43 {strides = array<i32>} : memref<32x128xf32, #tpu.memory_space<vmem>>, vector<32x128xf32>,
    return
  }
  func.func @transform_0(%arg0: i32) -> (i32, i32) {
    %c0_i32 = arith.constant 0 : i32
    %c0_i32_0 = arith.constant 0 : i32
    return %arg0, %c0_i32 : i32, i32
  }
  func.func @transform_1(%arg0: i32) -> (i32, i32) {
    %c0_i32 = arith.constant 0 : i32
    %c0_i32_0 = arith.constant 0 : i32
    return %arg0, %c0_i32 : i32, i32
  }
  func.func @transform_2(%arg0: i32) -> (i32, i32) {
    %c0_i32 = arith.constant 0 : i32
    %c0_i32_0 = arith.constant 0 : i32
    return %arg0, %c0_i32 : i32, i32
  }
  func.func @transform_3(%arg0: i32) -> (i32, i32) {
    %c0_i32 = arith.constant 0 : i32
    %c0_i32_0 = arith.constant 0 : i32
    return %arg0, %c0_i32 : i32, i32
  }
  func.func @transform_4(%arg0: i32) -> (i32, i32) {
    %c0_i32 = arith.constant 0 : i32
    %c0_i32_0 = arith.constant 0 : i32
    %c0_i32_1 = arith.constant 0 : i32
    return %c0_i32, %c0_i32_0 : i32, i32
  }
  func.func @transform_5(%arg0: i32) -> (i32, i32) {
    %c0_i32 = arith.constant 0 : i32
    %c0_i32_0 = arith.constant 0 : i32
    %c0_i32_1 = arith.constant 0 : i32
    return %c0_i32, %c0_i32_0 : i32, i32
  }
  func.func @transform_6(%arg0: i32) -> (i32, i32) {
    %c0_i32 = arith.constant 0 : i32
    %c0_i32_0 = arith.constant 0 : i32
    %c0_i32_1 = arith.constant 0 : i32
    return %c0_i32, %c0_i32_0 : i32, i32
  }
  func.func @transform_7(%arg0: i32) -> (i32, i32) {
    %c0_i32 = arith.constant 0 : i32
    %c0_i32_0 = arith.constant 0 : i32
    %c0_i32_1 = arith.constant 0 : i32
    return %c0_i32, %c0_i32_0 : i32, i32
  }
  func.func @transform_8(%arg0: i32) -> (i32, i32) {
    %c0_i32 = arith.constant 0 : i32
    %c0_i32_0 = arith.constant 0 : i32
    return %arg0, %c0_i32 : i32, i32
  }
  func.func @transform_9(%arg0: i32) -> (i32, i32) {
    %c0_i32 = arith.constant 0 : i32
    %c0_i32_0 = arith.constant 0 : i32
    return %arg0, %c0_i32 : i32, i32
  }
}

</mosaic_0001>

<bundles_post_ra>
// kernel: social_lstm_cell.1
= control target key start
LH: loop header
LB: loop body
LE: loop exit
PB: predicated region body
PF: predicated region fallthrough
CT: control target
= control target key end

     0   :  { %s2428_s0 = inlined_call_operand.vmem [shape: bf16[64,8], index: 0, kind: input, shape index: {}]   ;;  %s2429_s1 = inlined_call_operand.hbm [shape: bf16[64,128], index: 1, kind: input, shape index: {}]   ;;  %s2430_s2 = inlined_call_operand.vmem [shape: f32[64,128], index: 2, kind: input, shape index: {}]   ;;  %s2431_s3 = inlined_call_operand.vmem [shape: bf16[64,16], index: 3, kind: input, shape index: {}]   ;;  %s2432_s4 = inlined_call_operand.hbm [shape: bf16[8,512], index: 4, kind: input, shape index: {}]   ;;  %s2433_s5 = inlined_call_operand.hbm [shape: bf16[128,512], index: 5, kind: input, shape index: {}]   ;;  %s2434_s6 = inlined_call_operand.vmem [shape: bf16[16,512], index: 6, kind: input, shape index: {}]   ;;  %s2435_s7 = inlined_call_operand.hbm [shape: f32[1,512], index: 7, kind: input, shape index: {}]   ;;  %s2436_s8 = inlined_call_operand.hbm [shape: bf16[64,128], index: 8, kind: output, shape index: {0}]   ;;  %s2437_s9 = inlined_call_operand.hbm [shape: f32[64,128], index: 9, kind: output, shape index: {1}]  }
   0x1   :  { %2442 = sst [smem:[#allocation19_spill]] %s2432_s4 }
   0x2   :  { %15 = vsyncpa [#allocation3], 0 }
   0x3   :  { %17 = vsyncpa [#allocation3 + $0x1], 0 }
   0x4   :  { %18 = vsyncpa [#allocation6], 0 }
   0x5   :  { %19 = vsyncpa [#allocation9], 0 }
   0x6   :  { %20 = vsyncpa [#allocation4], 0 }
   0x7   :  { %22 = vsyncpa [#allocation4 + $0x1], 0 }
   0x8   :  { %23 = vsyncpa [#allocation12], 0 }
   0x9   :  { %25 = vsyncpa [#allocation12 + $0x1], 0  ;;  %s2070_s30 = smov 0   ;;  %s2072_s10 = smov 0  }
   0xa   :  { %s2074_s11 = smov 0   ;;  %s2076_s12 = smov 0  }
   0xb LB: > { %s2091_s13 = sadd.s32 4294967295, %s2003_s12   ;;  %s1448_s14 = sadd.s32 4294967294, %s2003_s12   ;;  %s2003_s12 = sphi %s2076_s12, %s2465_s12   ;;  %s1999_s11 = sphi %s2074_s11, %s2464_s11   ;;  %s1995_s10 = sphi %s2072_s10, %s2463_s10   ;;  %s1991_s30 = sphi %s2070_s30, %s2462_s30  }
   0xc   : > { %p77_p0 = scmp.ne.s32.totalorder %s1995_s10, %s1991_s30  ;;  %p2438_p1 = scmp.eq.s32.totalorder %s2091_s13, 0 }
   0xd   : > { %p243_p3 = scmp.eq.s32.totalorder %s1448_s14, 1  ;;  %p1449_p5 = scmp.ge.s32.totalorder %s2003_s12, 1 }
   0xe   : > { %p2100_p4 = por %p2438_p1, %p77_p0  ;;  %p276_p7 = scmp.lt.s32.totalorder %s2003_s12, 3 }
   0xf   : > { %p2105_p6 = por %p243_p3, %p77_p0  ;;  %s2005_s18 = smov [#allocation5]  }
  0x10   : > { %s2443_s15 = scalar_select %p2100_p4, 1, 0 }
  0x11   : > { %s2444_s16 = scalar_select %p2105_p6, 1, 0 }
  0x12   : > { %p2110_p8 = pnand %p1449_p5, %p276_p7  ;;  %s289_s19 = sshll.u32 %s2005_s18, 4  ;;  %s290_s19 = int_to_ptr.vmem [resolvable:$true] %s289_s19 }
  0x13   : > { %2445 = sst [smem:[#allocation18_spill]] %s2444_s16  ;;  %s2006_s20 = smov [#allocation7]  }
  0x14   : > { %s2446_s17 = scalar_select %p2110_p8, 1, 0 }
  0x15   : > { %p1606_p10 = pneg %p2110_p8  ;;  %s299_s21 = sshll.u32 %s2006_s20, 4  ;;  %s2123_s21 = int_to_ptr.vmem [resolvable:$true] %s299_s21 }
  0x16   : > { %s2007_s23 = smov [#allocation8]   ;;  %s2448_s4 = sld [smem:[#allocation19_spill]] }
  0x17   : > { %p2119_p11 = pnand %p1606_p10, %p2438_p1  ;;  %s2125_s24 = sshll.u32 %s2007_s23, 4  ;;  %s317_s24 = int_to_ptr.vmem [resolvable:$true] %s2125_s24 }
  0x19   : > { %p2135_p13 = pneg %p2119_p11 }
  0x1c   : > { %s1783_s27 = scalar_lea.hbm %s2448_s4, 256 }
  0x1d   : > { %p1784_p12 = scmp.ne.s32.totalorder %s2448_s4, %s1783_s27  ;;  %p1790_p5 = scmp.lt.u32.totalorder %s1783_s27, %s2448_s4 }
  0x1f   : > { %p1786_p0 = pnand %p2135_p13, %p1784_p12 }
  0x21   : > { %p1787_p3 = pneg %p1786_p0 }
  0x23   : > { %p1792_p7 = pnand %p1790_p5, %p1787_p3 }
  0x25   : > { %1795 = shalt.err (!%p1792_p7)
}
  0x26   : > { %s1796_s23 = scalar_lea.vmem %s290_s19, 256  ;;  %p1804_p2 = scmp.lt.s32.totalorder %s290_s19, %s290_s19 }
  0x27   : > { %p1797_p10 = scmp.ne.s32.totalorder %s290_s19, %s1796_s23  ;;  %p1805_p6 = scmp.lt.s32.totalorder %s1796_s23, %s1796_s23 }
  0x29   : > { %p1799_p9 = pnand %p1797_p10, %p2135_p13  ;;  %p1806_p4 = por %p1805_p6, %p1804_p2 }
  0x2b   : > { %p1800_p1 = pneg %p1799_p9 }
  0x2d   : > { %p1807_p8 = pnand %p1806_p4, %p1800_p1 }
  0x2f   : > { %1810 = shalt.err (!%p1807_p8)
}
  0x30   : > { %1609 = dma.hbm_to_vmem [thread:$0]  (!%p2119_p11), %s2448_s4, 256, %s290_s19, [#allocation6]  }
  0x31   : > { %s1811_s29 = scalar_lea.hbm %s2433_s5, 4096 }
  0x32   : > { %p1812_p9 = scmp.ne.s32.totalorder %s2433_s5, %s1811_s29  ;;  %p1818_p1 = scmp.lt.u32.totalorder %s1811_s29, %s2433_s5 }
  0x34   : > { %p1814_p12 = pnand %p1812_p9, %p2135_p13 }
  0x36   : > { %p1815_p2 = pneg %p1814_p12 }
  0x38   : > { %p1820_p4 = pnand %p1818_p1, %p1815_p2 }
  0x3a   : > { %1823 = shalt.err (!%p1820_p4)
}
  0x3b   : > { %s1824_s19 = scalar_lea.vmem %s2123_s21, 4096  ;;  %p1832_p3 = scmp.lt.s32.totalorder %s2123_s21, %s2123_s21 }
  0x3c   : > { %p1825_p6 = scmp.ne.s32.totalorder %s2123_s21, %s1824_s19  ;;  %p1833_p5 = scmp.lt.s32.totalorder %s1824_s19, %s1824_s19 }
  0x3e   : > { %p1827_p8 = pnand %p1825_p6, %p2135_p13  ;;  %p1834_p7 = por %p1833_p5, %p1832_p3 }
  0x40   : > { %p1828_p0 = pneg %p1827_p8 }
  0x42   : > { %p1835_p10 = pnand %p1834_p7, %p1828_p0 }
  0x44   : > { %1838 = shalt.err (!%p1835_p10)
}
  0x45   : > { %s2008_s25 = smov 256   ;;  %s2009_s16 = smov 16  }
  0x46   : > { %1612 = dma.hbm_to_vmem [thread:$0]  (!%p2119_p11), %s2433_s5, 4096, %s2123_s21, [#allocation6], %s2008_s25, %s2008_s25, %s2009_s16  }
  0x47   : > { %s1839_s18 = scalar_lea.hbm %s2435_s7, 64 }
  0x48   : > { %p1840_p9 = scmp.ne.s32.totalorder %s2435_s7, %s1839_s18  ;;  %p1846_p1 = scmp.lt.u32.totalorder %s1839_s18, %s2435_s7 }
  0x4a   : > { %p1842_p12 = pnand %p1840_p9, %p2135_p13 }
  0x4c   : > { %p1843_p2 = pneg %p1842_p12 }
  0x4e   : > { %p1848_p4 = pnand %p1846_p1, %p1843_p2 }
  0x50   : > { %1851 = shalt.err (!%p1848_p4)
}
  0x51   : > { %s1852_s26 = scalar_lea.vmem %s317_s24, 64  ;;  %p1860_p3 = scmp.lt.s32.totalorder %s317_s24, %s317_s24 }
  0x52   : > { %p1853_p6 = scmp.ne.s32.totalorder %s317_s24, %s1852_s26  ;;  %p1861_p5 = scmp.lt.s32.totalorder %s1852_s26, %s1852_s26 }
  0x54   : > { %p1855_p8 = pnand %p1853_p6, %p2135_p13  ;;  %p1862_p7 = por %p1861_p5, %p1860_p3 }
  0x56   : > { %p1856_p0 = pneg %p1855_p8 }
  0x58   : > { %p1863_p10 = pnand %p1862_p7, %p1856_p0 }
  0x5a   : > { %1866 = shalt.err (!%p1863_p10)
}
  0x5b   : > { %1615 = dma.hbm_to_vmem [thread:$0]  (!%p2119_p11), %s2435_s7, 64, %s317_s24, [#allocation9]  }
  0x5c   : > { %s2194_s4 = sadd.s32 1, %s2003_s12   ;;  %s64_s22 = sadd.s32 1, %s1999_s11 }
  0x5d   : > { %s61_s14 = ssub.s32 %s2003_s12, %s2194_s4  ;;  %p71_p9 = scmp.ne.s32.totalorder %s1999_s11, %s1995_s10 }
  0x5e   : > { %p62_p13 = scmp.eq.s32.totalorder %s61_s14, 0  ;;  %p72_p12 = scmp.eq.s32.totalorder %s2003_s12, 0 }
  0x5f   : > { %p1630_p2 = scmp.lt.s32.totalorder %s2003_s12, 2  ;;  %p2450_p4 = scmp.eq.s32.totalorder %s2091_s13, 1 }
  0x60   : > { %s2204_s16 = scalar_select %p62_p13, %s1999_s11, %s64_s22  }
  0x61   : > { %p73_p1 = por %p72_p12, %p71_p9  ;;  %p2208_p6 = por %p2450_p4, %p71_p9 }
  0x62   : > { %s336_s28 = sand.u32 1, %s1999_s11   ;;  %s1538_s29 = sshll.u32 %s2003_s12, 8 }
  0x63   : > { %s1454_s24 = sshll.u32 %s336_s28, 4  ;;  %s2217_s23 = scalar_lea.hbm %s2429_s1, %s1538_s29 }
  0x64   : > { %s340_s19 = scalar_lea.vmem [#allocation2], %s1454_s24  ;;  %p2219_p11 = pnand %p1630_p2, %p73_p1 }
  0x65   : > { %s347_s26 = sshll.u32 %s340_s19, 4  ;;  %s2225_s25 = scalar_lea.sflag [#allocation3], %s336_s28  ;;  %s2223_s26 = int_to_ptr.vmem [resolvable:$true] %s347_s26 }
  0x66   : > { %s1867_s14 = scalar_lea.hbm %s2217_s23, 256  ;;  %p1869_p0 = pneg %p2219_p11 }
  0x67   : > { %p1868_p8 = scmp.ne.s32.totalorder %s2217_s23, %s1867_s14  ;;  %s1872_s24 = scalar_lea.hbm %s2429_s1, 512 }
  0x68   : > { %p1873_p7 = scmp.lt.u32.totalorder %s2217_s23, %s2429_s1  ;;  %p1874_p10 = scmp.lt.u32.totalorder %s1872_s24, %s1867_s14 }
  0x69   : > { %p1870_p3 = pnand %p1869_p0, %p1868_p8  ;;  %p1876_p9 = scmp.lt.u32.totalorder %s1867_s14, %s2217_s23 }
  0x6a   : > { %p1875_p13 = por %p1874_p10, %p1873_p7 }
  0x6b   : > { %p1871_p5 = pneg %p1870_p3 }
  0x6c   : > { %p1877_p12 = por %p1876_p9, %p1875_p13 }
  0x6e   : > { %p1878_p2 = pnand %p1877_p12, %p1871_p5 }
  0x70   : > { %1881 = shalt.err (!%p1878_p2)
}
  0x71   : > { %s1882_s28 = scalar_lea.vmem %s2223_s26, 256  ;;  %s2010_s19 = smov [#allocation2]  }
  0x72   : > { %p1883_p1 = scmp.ne.s32.totalorder %s2223_s26, %s1882_s28  ;;  %s1887_s22 = sshll.u32 %s2010_s19, 4  ;;  %s1888_s22 = int_to_ptr.vmem [resolvable:$false] %s1887_s22 }
  0x73   : > { %s1889_s29 = scalar_lea.vmem %s1888_s22, 512  ;;  %p1890_p3 = scmp.lt.s32.totalorder %s2223_s26, %s1888_s22 }
  0x74   : > { %p1885_p4 = pnand %p1883_p1, %p1869_p0  ;;  %p1891_p7 = scmp.lt.s32.totalorder %s1889_s29, %s1882_s28 }
  0x76   : > { %p1886_p8 = pneg %p1885_p4  ;;  %p1892_p10 = por %p1891_p7, %p1890_p3 }
  0x78   : > { %p1893_p13 = pnand %p1892_p10, %p1886_p8 }
  0x7a   : > { %1896 = shalt.err (!%p1893_p13)
}
  0x7b   : > { %s2011_s14 = smov 64   ;;  %s2012_s24 = smov 4  }
  0x7c   : > { %1619 = dma.hbm_to_vmem [thread:$0]  (!%p2219_p11), %s2217_s23, 256, %s2223_s26, %s2225_s25, %s2011_s14, %s2011_s14, %s2012_s24  }
  0x7d   : > { %p2453_p0 = scmp.ne.s32.totalorder %s2446_s17, 0 }
  0x7e   : > { %s2256_s18 = sand.u32 (!%p2453_p0), 1, %s1995_s10   ;;  %p2454_p5 = scmp.ne.s32.totalorder (!%p2453_p0), %s2443_s15, 0 }
  0x7f   : > { %377 = sbr.rel (%p2453_p0) target bundleno = 497 (0x1f1), region = 52  ;;  %s1458_s20 = sshll.u32 (!%p2453_p0), %s2256_s18, 4 }
  0x80   : > { %s380_s28 = scalar_lea.sflag (!%p2453_p0), [#allocation3], %s2256_s18  ;;  %s2262_s19 = scalar_lea.vmem (!%p2453_p0), [#allocation2], %s1458_s20 }
  0x86   : > { %1970 = dma.done.wait (%p2454_p5), %s380_s28, 256  }
  0x87   : > { %1972 = vsyncadd (%p2454_p5), %s380_s28, 4294967040  ;;  %p2455_p11 = scmp.eq.s32.totalorder %s2091_s13, 0 }
  0x89   : > { %1974 = dma.done.wait (%p2455_p11), [#allocation6], 4352   ;;  %p2456_p9 = pmov %p2455_p11 }
  0x8b   : > { %1976 = vsyncadd (%p2456_p9), [#allocation6], 4294962944  ;;  %p2457_p12 = pmov %p2456_p9 }
  0x8c   : > { %p2458_p2 = pmov %p2456_p9 }
  0x8d   : > { %1978 = dma.done.wait (%p2457_p12), [#allocation9], 64  }
  0x8e   : > { %1980 = vsyncadd (%p2458_p2), [#allocation9], 4294967232  ;;  %v2013_v0 = vmov 0   ;;  %v1679_v1 = vld [vmem:[#allocation7 + $0x4] ss:$16 sps:$4 sm:$0xff]   ;;  %s1464_s15 = sshll.u32 %s2091_s13, 2  ;;  %v1107_v51 = vlaneseq }
  0x8f   : > { %718 = vmatprep.mubr.bf16.mxu0 %v2013_v0  ;;  %771 = vmatprep.mubr.bf16.mxu1 %v2013_v0  ;;  %v1681_v2 = vld [vmem:[#allocation7 + $0xc] ss:$16 sps:$4 sm:$0xff]   ;;  %v1683_v3 = vld [vmem:[#allocation7] ss:$16 sps:$4 sm:$0xff]   ;;  %v1684_v4 = vld [vmem:[#allocation7 + $0x8] ss:$16 sps:$4 sm:$0xff]  }
  0x90   : > { %686 = vmatprep.subr.bf16.mxu0 %v1679_v1  ;;  %739 = vmatprep.subr.bf16.mxu1 %v1681_v2  ;;  %v1685_v5 = vld [vmem:[#allocation7 + $0x24] ss:$16 sps:$4 sm:$0xff]   ;;  %v1687_v6 = vld [vmem:[#allocation7 + $0x2c] ss:$16 sps:$4 sm:$0xff]   ;;  %v1689_v7 = vld [vmem:[#allocation7 + $0x20] ss:$16 sps:$4 sm:$0xff]  }
  0x91   : > { %687 = vmatpush1.bf16.msra.mxu0 %v1683_v3  ;;  %740 = vmatpush1.bf16.msra.mxu1 %v1684_v4  ;;  %v1690_v8 = vld [vmem:[#allocation7 + $0x28] ss:$16 sps:$4 sm:$0xff]   ;;  %v1691_v9 = vld [vmem:[#allocation7 + $0x44] ss:$16 sps:$4 sm:$0xff]   ;;  %v1693_v10 = vld [vmem:[#allocation7 + $0x4c] ss:$16 sps:$4 sm:$0xff]  }
  0x92   : > { %688 = vmatprep.subr.bf16.mxu0 %v1685_v5  ;;  %741 = vmatprep.subr.bf16.mxu1 %v1687_v6  ;;  %v1695_v11 = vld [vmem:[#allocation7 + $0x40] ss:$16 sps:$4 sm:$0xff]   ;;  %v1696_v12 = vld [vmem:[#allocation7 + $0x48] ss:$16 sps:$4 sm:$0xff]   ;;  %v1697_v13 = vld [vmem:[#allocation7 + $0x64] ss:$16 sps:$4 sm:$0xff]  }
  0x93   : > { %v1699_v14 = vld [vmem:[#allocation7 + $0x6c] ss:$16 sps:$4 sm:$0xff]   ;;  %v1701_v15 = vld [vmem:[#allocation7 + $0x60] ss:$16 sps:$4 sm:$0xff]   ;;  %v1702_v16 = vld [vmem:[#allocation7 + $0x68] ss:$16 sps:$4 sm:$0xff]  }
  0x94   : > { %v1703_v17 = vld [vmem:[#allocation7 + $0x84] ss:$16 sps:$4 sm:$0xff]   ;;  %p451_p1 = scmp.lt.s32.totalorder %s1464_s15, 7  ;;  %v1705_v18 = vld [vmem:[#allocation7 + $0x8c] ss:$16 sps:$4 sm:$0xff]   ;;  %vm819_vm0 = vcmask 1043456  }
  0x95   : > { %689 = vmatpush1.bf16.msra.mxu0 %v1689_v7  ;;  %742 = vmatpush1.bf16.msra.mxu1 %v1690_v8  ;;  %v1707_v19 = vld [vmem:[#allocation7 + $0x80] ss:$16 sps:$4 sm:$0xff]   ;;  %v1708_v20 = vld [vmem:[#allocation7 + $0x88] ss:$16 sps:$4 sm:$0xff]   ;;  %v1709_v21 = vld [vmem:[#allocation7 + $0xa4] ss:$16 sps:$4 sm:$0xff]  }
  0x96   : > { %690 = vmatprep.subr.bf16.mxu0 %v1691_v9  ;;  %743 = vmatprep.subr.bf16.mxu1 %v1693_v10  ;;  %s2467_s15 = smov (!%p451_p1, %s1464_s15), 7  ;;  %v1711_v22 = vld [vmem:[#allocation7 + $0xac] ss:$16 sps:$4 sm:$0xff]   ;;  %v1713_v23 = vld [vmem:[#allocation7 + $0xa0] ss:$16 sps:$4 sm:$0xff]   ;;  %vm812_vm1 = vcmask 64512  }
  0x97   : > { %v1714_v24 = vld [vmem:[#allocation7 + $0xa8] ss:$16 sps:$4 sm:$0xff]   ;;  %v1715_v25 = vld [vmem:[#allocation7 + $0xc4] ss:$16 sps:$4 sm:$0xff]   ;;  %s1465_s17 = sshll.u32 %s2467_s15, 2  ;;  %vm976_vm2 = vcmask 130048  }
  0x98   : > { %v1717_v26 = vld [vmem:[#allocation7 + $0xcc] ss:$16 sps:$4 sm:$0xff]   ;;  %v1719_v27 = vld [vmem:[#allocation7 + $0xc0] ss:$16 sps:$4 sm:$0xff]   ;;  %v1720_v28 = vld [vmem:[#allocation7 + $0xc8] ss:$16 sps:$4 sm:$0xff]   ;;  %s2285_s21 = scalar_lea.vmem %s2428_s0, %s1465_s17  ;;  %s2290_s29 = scalar_lea.vmem %s2431_s3, %s1465_s17 }
  0x99   : > { %691 = vmatpush1.bf16.msra.mxu0 %v1695_v11  ;;  %744 = vmatpush1.bf16.msra.mxu1 %v1696_v12  ;;  %v1721_v29 = vld [vmem:[#allocation7 + $0xe4] ss:$16 sps:$4 sm:$0xff]   ;;  %v1723_v30 = vld [vmem:[#allocation7 + $0xec] ss:$16 sps:$4 sm:$0xff]   ;;  %v1725_v33 = vld [vmem:[#allocation7 + $0xe0] ss:$16 sps:$4 sm:$0xff]  }
  0x9a   : > { %692 = vmatprep.subr.bf16.mxu0 %v1697_v13  ;;  %745 = vmatprep.subr.bf16.mxu1 %v1699_v14  ;;  %v476_v31 = vld [vmem:[#allocation5] sm:$0xff]  ;;  %v477_v32 = vld [vmem:[#allocation5 + $0x8] sm:$0xff]  ;;  %v1108_v52 = vshrl.u32 %v1107_v51, 7  ;;  %v1105_v54 = vld [vmem:[#allocation8] sm:$0xf]  ;;  %s1544_s28 = sshll.u32 %s2091_s13, 9 }
  0x9b   : > { %v1726_v34 = vld [vmem:[#allocation7 + $0xe8] ss:$16 sps:$4 sm:$0xff]   ;;  %v1507_v35 = vcombine.high %v476_v31, %v476_v31  ;;  %v1506_v36 = vcombine.low %v476_v31, %v476_v31  ;;  %v1509_v37 = vcombine.high %v477_v32, %v477_v32  ;;  %v1508_v38 = vcombine.low %v477_v32, %v477_v32  ;;  %v1727_v39 = vld [vmem:[%s2262_s19] sm:$0xff]   ;;  %v1739_v43 = vld [vmem:[%s2434_s6 + $0xc] ss:$16 sps:$4 sm:$0xff]   ;;  %s2347_s25 = scalar_lea.hbm %s2437_s9, %s1544_s28  ;;  %s1249_s22 = scalar_lea.sflag [#allocation12], %s2256_s18 }
  0x9c   : > { %v1736_v42 = vld [vmem:[%s2434_s6 + $0x4] ss:$16 sps:$4 sm:$0xff]   ;;  %v1732_v44 = vld [vmem:[%s2262_s19 + $0x8] sm:$0xff]   ;;  %v1734_v46 = vld [vmem:[%s2434_s6] ss:$16 sps:$4 sm:$0xff]   ;;  %v1109_v53 = vsub.s32 0, %v1108_v52 }
  0x9d   : > { %693 = vmatpush1.bf16.msra.mxu0 %v1701_v15  ;;  %746 = vmatpush1.bf16.msra.mxu1 %v1702_v16  ;;  %v821_v40 = vsel %vm819_vm0, %v1506_v36, 0  ;;  %v827_v41 = vsel %vm819_vm0, %v1508_v38, 0  ;;  %v1733_v45 = vld [vmem:[%s2285_s21] sm:$0xff]   ;;  %v1737_v47 = vld [vmem:[%s2434_s6 + $0x8] ss:$16 sps:$4 sm:$0xff]   ;;  %v1113_v55 = vsub.s32 1, %v1108_v52 }
  0x9e   : > { %694 = vmatprep.subr.bf16.mxu0 %v1703_v17  ;;  %747 = vmatprep.subr.bf16.mxu1 %v1705_v18  ;;  %v1740_v48 = vld [vmem:[%s2285_s21 + $0x8] sm:$0xff]   ;;  %v1741_v49 = vld [vmem:[%s2290_s29] sm:$0xff]   ;;  %v1110_v56 = vrot.slane %v1105_v54, %v1109_v53  ;;  %v1121_v57 = vsub.s32 3, %v1108_v52  ;;  %v1117_v58 = vsub.s32 2, %v1108_v52  ;;  %s1467_s19 = sshll.u32 %s2467_s15, 3  ;;  %s1463_s15 = sshll.u32 %s2256_s18, 5 }
  0x9f   : > { %v1742_v50 = vld [vmem:[%s2290_s29 + $0x8] sm:$0xff]   ;;  %v1114_v59 = vrot.slane %v1105_v54, %v1113_v55  ;;  %s2328_s14 = scalar_lea.vmem %s2430_s2, %s1467_s19  ;;  %s2335_s24 = scalar_lea.vmem [#allocation11], %s1463_s15 }
  0xa0   : > { %v1122_v2 = vrot.slane %v1105_v54, %v1121_v57  ;;  %v2320_v3 = vrot.slane %v1105_v54, %v1117_v58  ;;  %v1144_v57 = vld [vmem:[%s2328_s14 + $0x8] sm:$0xff]  ;;  %s1278_s17 = sshll.u32 %s2335_s24, 4  ;;  %s2014_s21 = smov [#allocation11]   ;;  %s2349_s17 = int_to_ptr.vmem [resolvable:$true] %s1278_s17 }
  0xa1   : > { %695 = vmatpush1.bf16.msra.mxu0 %v1707_v19  ;;  %748 = vmatpush1.bf16.msra.mxu1 %v1708_v20  ;;  %s1897_s19 = scalar_lea.vmem %s2349_s17, 512  ;;  %s1901_s29 = sshll.u32 %s2014_s21, 4  ;;  %s1902_s29 = int_to_ptr.vmem [resolvable:$false] %s1901_s29 }
  0xa2   : > { %696 = vmatprep.subr.bf16.mxu0 %v1709_v21  ;;  %749 = vmatprep.subr.bf16.mxu1 %v1711_v22  ;;  %p1898_p4 = scmp.ne.s32.totalorder %s2349_s17, %s1897_s19  ;;  %p1904_p7 = scmp.lt.s32.totalorder %s2349_s17, %s1902_s29 }
  0xa4   : > { %p1899_p8 = pnand %p1898_p4, %p2208_p6 }
  0xa5   : > { %697 = vmatpush1.bf16.msra.mxu0 %v1713_v23  ;;  %750 = vmatpush1.bf16.msra.mxu1 %v1714_v24 }
  0xa6   : > { %698 = vmatprep.subr.bf16.mxu0 %v1715_v25  ;;  %751 = vmatprep.subr.bf16.mxu1 %v1717_v26  ;;  %p1900_p3 = pneg %p1899_p8 }
  0xa9   : > { %699 = vmatpush1.bf16.msra.mxu0 %v1719_v27  ;;  %752 = vmatpush1.bf16.msra.mxu1 %v1720_v28 }
  0xaa   : > { %700 = vmatprep.subr.bf16.mxu0 %v1721_v29  ;;  %753 = vmatprep.subr.bf16.mxu1 %v1723_v30 }
  0xad   : > { %701 = vmatpush1.bf16.msra.mxu0 %v1725_v33  ;;  %754 = vmatpush1.bf16.msra.mxu1 %v1726_v34 }
  0xae   : > { %1510 = vmatprep.subr.msk.bf16.mxu0 %vm819_vm0, %v1507_v35  ;;  %1513 = vmatprep.subr.msk.bf16.mxu1 %vm819_vm0, %v1509_v37 }
  0xb0   : > { %719 = vmatmul.mubr.bf16.vlgmr.msra.gmra.mrb[0].mxu0 %v1727_v39  ;;  %772 = vmatmul.mubr.bf16.vlgmr.msra.gmra.mrb[0].mxu1 %v1727_v39 }
  0xb1   : > { %833 = vmatpush1.bf16.msra.mxu0 %v821_v40  ;;  %728 = vmatprep.mubr.bf16.mxu0 %v2013_v0 }
  0xb2   : > { %781 = vmatprep.mubr.bf16.mxu1 %v2013_v0  ;;  %886 = vmatpush1.bf16.msra.mxu1 %v827_v41 }
  0xb3   : > { %983 = vmatprep.subr.bf16.mxu0 %v1736_v42  ;;  %1036 = vmatprep.subr.bf16.mxu1 %v1739_v43 }
  0xb8   : > { %729 = vmatmul.mubr.bf16.gmra.mrb[4].mxu0 %v1732_v44  ;;  %782 = vmatmul.mubr.bf16.gmra.mrb[4].mxu1 %v1732_v44 }
  0xb9   : > { %864 = vmatprep.mubr.bf16.mxu0 %v2013_v0  ;;  %917 = vmatprep.mubr.bf16.mxu1 %v2013_v0 }
  0xc0   : > { %1511 = vmatmul.mubr.msk.bf16.vlgmr.msra.gmra.mrb[0].mxu0 %vm812_vm1, %v1733_v45  ;;  %1514 = vmatmul.mubr.msk.bf16.vlgmr.msra.gmra.mrb[0].mxu1 %vm812_vm1, %v1733_v45 }
  0xc1   : > { %984 = vmatpush1.bf16.msra.mxu0 %v1734_v46  ;;  %874 = vmatprep.mubr.bf16.mxu0 %v2013_v0  ;;  %v1143_v46 = vld [vmem:[%s2328_s14] sm:$0xff] }
  0xc2   : > { %927 = vmatprep.mubr.bf16.mxu1 %v2013_v0  ;;  %1037 = vmatpush1.bf16.msra.mxu1 %v1737_v47 }
  0xc8   : > { %1512 = vmatmul.mubr.msk.bf16.gmra.mrb[4].mxu0 %vm812_vm1, %v1740_v48  ;;  %1515 = vmatmul.mubr.msk.bf16.gmra.mrb[4].mxu1 %vm812_vm1, %v1740_v48 }
  0xc9   : > { %1015 = vmatprep.mubr.bf16.mxu0 %v2013_v0  ;;  %1068 = vmatprep.mubr.bf16.mxu1 %v2013_v0 }
  0xd0   : > { %1522 = vmatmul.mubr.msk.bf16.vlgmr.msra.gmra.mrb[0].mxu0 %vm976_vm2, %v1741_v49  ;;  %1524 = vmatmul.mubr.msk.bf16.vlgmr.msra.gmra.mrb[0].mxu1 %vm976_vm2, %v1741_v49 }
  0xd1   : > { %1025 = vmatprep.mubr.bf16.mxu0 %v2013_v0  ;;  %1078 = vmatprep.mubr.bf16.mxu1 %v2013_v0 }
  0xd8   : > { %1523 = vmatmul.mubr.msk.bf16.gmra.mrb[4].mxu0 %vm976_vm2, %v1742_v50  ;;  %1525 = vmatmul.mubr.msk.bf16.gmra.mrb[4].mxu1 %vm976_vm2, %v1742_v50 }
 0x1a3   : > { %v1017_v60 = vpop.f32.mrb[0].mxu0  ;;  %v1070_v61 = vpop.f32.mrb[0].mxu1 }
 0x1a4   : > { %v1127_v62 = vadd.f32 %v1110_v56, %v1017_v60  ;;  %v1019_v63 = vpop.f32.mrb[1].mxu0  ;;  %v1072_v1 = vpop.f32.mrb[1].mxu1  ;;  %v1129_v14 = vadd.f32 %v2320_v3, %v1070_v61 }
 0x1a5   : > { %v1128_v0 = vadd.f32 %v1114_v59, %v1019_v63  ;;  %v1021_v4 = vpop.f32.mrb[2].mxu0  ;;  %v1074_v5 = vpop.f32.mrb[2].mxu1  ;;  %v1130_v12 = vadd.f32 %v1122_v2, %v1072_v1 }
 0x1a6   : > { %v1147_v6 = vmul.f32 0.5, %v1127_v62  ;;  %v1131_v7 = vadd.f32 %v1110_v56, %v1021_v4  ;;  %v1023_v8 = vpop.f32.mrb[3].mxu0  ;;  %v1076_v9 = vpop.f32.mrb[3].mxu1  ;;  %v1179_v22 = vmul.f32 0.5, %v1129_v14  ;;  %v1133_v32 = vadd.f32 %v2320_v3, %v1074_v5 }
 0x1a7   : > { %v1163_v10 = vmul.f32 0.5, %v1128_v0  ;;  %v1132_v11 = vadd.f32 %v1114_v59, %v1023_v8  ;;  %v1134_v16 = vadd.f32 %v1122_v2, %v1076_v9  ;;  %v1145_v8 = vld [vmem:[%s2328_s14 + $0x10] sm:$0xff] }
 0x1a8   : > { %1743 = vtanh.f32 %v1147_v6  ;;  %v1148_v13 = vmul.f32 0.5, %v1131_v7  ;;  %v1180_v40 = vmul.f32 0.5, %v1133_v32 }
 0x1a9   : > { %v1164_v15 = vmul.f32 0.5, %v1132_v11  ;;  %1745 = vtanh.f32 %v1163_v10 }
 0x1aa   : > { %1747 = vtanh.f32 %v1148_v13 }
 0x1ab   : > { %v1027_v17 = vpop.f32.mrb[4].mxu0  ;;  %v1080_v18 = vpop.f32.mrb[4].mxu1  ;;  %1749 = vtanh.f32 %v1130_v12 }
 0x1ac   : > { %v1135_v19 = vadd.f32 %v1110_v56, %v1027_v17  ;;  %v1029_v20 = vpop.f32.mrb[5].mxu0  ;;  %v1082_v21 = vpop.f32.mrb[5].mxu1  ;;  %1751 = vtanh.f32 %v1164_v15  ;;  %v1137_v41 = vadd.f32 %v2320_v3, %v1080_v18  ;;  %v1146_v17 = vld [vmem:[%s2328_s14 + $0x18] sm:$0xff]  ;;  %s1903_s14 = scalar_lea.vmem %s1902_s29, 1024 }
 0x1ad   : > { %v1136_v23 = vadd.f32 %v1114_v59, %v1029_v20  ;;  %v1031_v24 = vpop.f32.mrb[6].mxu0  ;;  %v1084_v25 = vpop.f32.mrb[6].mxu1  ;;  %1753 = vtanh.f32 %v1134_v16  ;;  %v1138_v33 = vadd.f32 %v1122_v2, %v1082_v21  ;;  %p1905_p10 = scmp.lt.s32.totalorder %s1903_s14, %s1897_s19 }
 0x1ae   : > { %v1149_v26 = vmul.f32 0.5, %v1135_v19  ;;  %v1139_v27 = vadd.f32 %v1110_v56, %v1031_v24  ;;  %v1033_v28 = vpop.f32.mrb[7].mxu0  ;;  %v1086_v29 = vpop.f32.mrb[7].mxu1  ;;  %v1141_v51 = vadd.f32 %v2320_v3, %v1084_v25  ;;  %v1181_v54 = vmul.f32 0.5, %v1137_v41 }
 0x1af   : > { %v1165_v30 = vmul.f32 0.5, %v1136_v23  ;;  %v1140_v31 = vadd.f32 %v1114_v59, %v1033_v28  ;;  %v1142_v38 = vadd.f32 %v1122_v2, %v1086_v29  ;;  %p1906_p13 = por %p1905_p10, %p1904_p7 }
 0x1b0   : > { %1755 = vtanh.f32 %v1149_v26  ;;  %v1150_v34 = vmul.f32 0.5, %v1139_v27  ;;  %v1182_v1 = vmul.f32 0.5, %v1141_v51 }
 0x1b1   : > { %1757 = vtanh.f32 %v1179_v22  ;;  %v1166_v35 = vmul.f32 0.5, %v1140_v31  ;;  %p1907_p0 = pnand %p1906_p13, %p1900_p3 }
 0x1b2   : > { %v1744_v36 = vpop.eup %1743  ;;  %1759 = vtanh.f32 %v1165_v30 }
 0x1b3   : > { %v1155_v37 = vadd.f32 1.0, %v1744_v36  ;;  %1761 = vtanh.f32 %v1150_v34  ;;  %v1746_v39 = vpop.eup %1745 }
 0x1b4   : > { %1763 = vtanh.f32 %v1138_v33  ;;  %v1748_v42 = vpop.eup %1747  ;;  %v1171_v44 = vadd.f32 1.0, %v1746_v39 }
 0x1b5   : > { %v1159_v43 = vmul.f32 0.5, %v1155_v37  ;;  %1765 = vtanh.f32 %v1166_v35  ;;  %v1750_v45 = vpop.eup %1749  ;;  %v1156_v47 = vadd.f32 1.0, %v1748_v42 }
 0x1b6   : > { %v1752_v48 = vpop.eup %1751  ;;  %v1175_v49 = vmul.f32 0.5, %v1171_v44  ;;  %1767 = vtanh.f32 %v1142_v38 }
 0x1b7   : > { %v1203_v50 = vmul.f32 %v1750_v45, %v1159_v43  ;;  %v1160_v52 = vmul.f32 0.5, %v1156_v47  ;;  %1769 = vtanh.f32 %v1180_v40  ;;  %v1172_v53 = vadd.f32 1.0, %v1752_v48  ;;  %v1754_v55 = vpop.eup %1753 }
 0x1b8   : > { %v1199_v56 = vmul.f32 %v1175_v49, %v1143_v46  ;;  %1771 = vtanh.f32 %v1181_v54 }
 0x1b9   : > { %v1176_v59 = vmul.f32 0.5, %v1172_v53  ;;  %v1204_v60 = vmul.f32 %v1754_v55, %v1160_v52 }
 0x1ba   : > { %v1756_v58 = vpop.eup %1755  ;;  %v1207_v62 = vadd.f32 %v1203_v50, %v1199_v56 }
 0x1bb   : > { %v1758_v61 = vpop.eup %1757  ;;  %v1157_v63 = vadd.f32 1.0, %v1756_v58  ;;  %v1200_v0 = vmul.f32 %v1176_v59, %v1144_v57 }
 0x1bc   : > { %v1760_v2 = vpop.eup %1759  ;;  %1773 = vtanh.f32 %v1207_v62  ;;  %1239 = vst [vmem:[%s2335_s24] sm:$0xff] %v1207_v62  ;;  %v1187_v19 = vadd.f32 1.0, %v1758_v61 }
 0x1bd   : > { %v1762_v3 = vpop.eup %1761  ;;  %v1161_v4 = vmul.f32 0.5, %v1157_v63  ;;  %v1173_v5 = vadd.f32 1.0, %v1760_v2  ;;  %v1208_v7 = vadd.f32 %v1204_v60, %v1200_v0  ;;  %1775 = vtanh.f32 %v1182_v1 }
 0x1be   : > { %v1764_v6 = vpop.eup %1763  ;;  %v1158_v9 = vadd.f32 1.0, %v1762_v3  ;;  %v1191_v26 = vmul.f32 0.5, %v1187_v19 }
 0x1bf   : > { %v1766_v10 = vpop.eup %1765  ;;  %v1177_v11 = vmul.f32 0.5, %v1173_v5  ;;  %v1205_v12 = vmul.f32 %v1764_v6, %v1161_v4  ;;  %1777 = vtanh.f32 %v1208_v7  ;;  %1240 = vst [vmem:[%s2335_s24 + $0x8] sm:$0xff] %v1208_v7 }
 0x1c0   : > { %v1162_v13 = vmul.f32 0.5, %v1158_v9  ;;  %v1174_v14 = vadd.f32 1.0, %v1766_v10  ;;  %v1768_v15 = vpop.eup %1767 }
 0x1c1   : > { %v1201_v16 = vmul.f32 %v1177_v11, %v1145_v8  ;;  %v1770_v18 = vpop.eup %1769 }
 0x1c2   : > { %v1178_v20 = vmul.f32 0.5, %v1174_v14  ;;  %v1206_v21 = vmul.f32 %v1768_v15, %v1162_v13  ;;  %v1188_v24 = vadd.f32 1.0, %v1770_v18  ;;  %v1772_v25 = vpop.eup %1771 }
 0x1c3   : > { %v1209_v22 = vadd.f32 %v1205_v12, %v1201_v16 }
 0x1c4   : > { %v1202_v23 = vmul.f32 %v1178_v20, %v1146_v17  ;;  %v1192_v31 = vmul.f32 0.5, %v1188_v24 }
 0x1c5   : > { %1779 = vtanh.f32 %v1209_v22  ;;  %1241 = vst [vmem:[%s2335_s24 + $0x10] sm:$0xff] %v1209_v22 }
 0x1c6   : > { %v1210_v27 = vadd.f32 %v1206_v21, %v1202_v23  ;;  %v1774_v28 = vpop.eup %1773 }
 0x1c7   : > { %v1215_v29 = vmul.f32 %v1774_v28, %v1191_v26  ;;  %v1776_v30 = vpop.eup %1775 }
 0x1c8   : > { %1781 = vtanh.f32 %v1210_v27  ;;  %1242 = vst [vmem:[%s2335_s24 + $0x18] sm:$0xff] %v1210_v27 }
 0x1c9   : > { %1910 = shalt.err (!%p1907_p0)
}
 0x1ca   : > { %s1911_s15 = scalar_lea.hbm %s2347_s25, 512  ;;  %s1915_s23 = scalar_lea.hbm %s2437_s9, 1024 }
 0x1cb   : > { %p1912_p5 = scmp.ne.s32.totalorder %s2347_s25, %s1911_s15  ;;  %p1916_p12 = scmp.lt.u32.totalorder %s2347_s25, %s2437_s9 }
 0x1cc   : > { %p1917_p2 = scmp.lt.u32.totalorder %s1915_s23, %s1911_s15  ;;  %p1919_p4 = scmp.lt.u32.totalorder %s1911_s15, %s2347_s25 }
 0x1cd   : > { %p1913_p11 = pnand %p1912_p5, %p2208_p6 }
 0x1ce   : > { %p1918_p1 = por %p1917_p2, %p1916_p12 }
 0x1cf   : > { %p1914_p9 = pneg %p1913_p11 }
 0x1d0   : > { %p1920_p8 = por %p1919_p4, %p1918_p1 }
 0x1d2   : > { %p1921_p3 = pnand %p1920_p8, %p1914_p9 }
 0x1d4   : > { %1924 = shalt.err (!%p1921_p3)
}
 0x1d5   : > { %s2015_s19 = smov 128   ;;  %s2016_s29 = smov 8   ;;  %v1778_v32 = vpop.eup %1777  ;;  %v1189_v33 = vadd.f32 1.0, %v1772_v25  ;;  %v1190_v35 = vadd.f32 1.0, %v1776_v30 }
 0x1d6   : > { %1603 = dma.vmem_to_hbm [thread:$0]  (%p2208_p6), %s2349_s17, 512, %s2347_s25, %s1249_s22, %s2015_s19, %s2015_s19, %s2016_s29   ;;  %v1216_v34 = vmul.f32 %v1778_v32, %v1192_v31  ;;  %v1780_v38 = vpop.eup %1779 }
 0x1d7   : > { %v1193_v37 = vmul.f32 0.5, %v1189_v33  ;;  %s442_s14 = scalar_lea.vmem [#allocation10], %s1458_s20  ;;  %v1194_v40 = vmul.f32 0.5, %v1190_v35  ;;  %s1543_s15 = sshll.u32 %s2091_s13, 8  ;;  %v1782_v41 = vpop.eup %1781 }
 0x1d8   : > { %v1548_v36 = vpack.c.bf16 %v1216_v34, %v1215_v29  ;;  %s1262_s24 = sshll.u32 %s442_s14, 4  ;;  %s2382_s25 = scalar_lea.hbm %s2436_s8, %s1543_s15  ;;  %s2384_s24 = int_to_ptr.vmem [resolvable:$true] %s1262_s24 }
 0x1d9   : > { %v1217_v39 = vmul.f32 %v1780_v38, %v1193_v37  ;;  %v1218_v42 = vmul.f32 %v1782_v41, %v1194_v40  ;;  %s1244_s20 = scalar_lea.sflag [#allocation4], %s2256_s18  ;;  %s1925_s22 = scalar_lea.vmem %s2384_s24, 256 }
 0x1da   : > { %1549 = vst [vmem:[%s442_s14] sm:$0xff] %v1548_v36   ;;  %p1926_p7 = scmp.ne.s32.totalorder %s2384_s24, %s1925_s22  ;;  %s2017_s13 = smov [#allocation10]  }
 0x1db   : > { %v1553_v43 = vpack.c.bf16 %v1218_v42, %v1217_v39  ;;  %s1929_s23 = sshll.u32 %s2017_s13, 4  ;;  %s1930_s23 = int_to_ptr.vmem [resolvable:$false] %s1929_s23 }
 0x1dc   : > { %p1927_p10 = pnand %p1926_p7, %p2208_p6  ;;  %s1931_s26 = scalar_lea.vmem %s1930_s23, 512 }
 0x1dd   : > { %1555 = vst [vmem:[%s442_s14 + $0x8] sm:$0xff] %v1553_v43   ;;  %p1932_p0 = scmp.lt.s32.totalorder %s2384_s24, %s1930_s23  ;;  %p1933_p5 = scmp.lt.s32.totalorder %s1931_s26, %s1925_s22 }
 0x1de   : > { %p1928_p13 = pneg %p1927_p10 }
 0x1df   : > { %p1934_p11 = por %p1933_p5, %p1932_p0 }
 0x1e1   : > { %p1935_p9 = pnand %p1934_p11, %p1928_p13 }
 0x1e3   : > { %1938 = shalt.err (!%p1935_p9)
}
 0x1e4   : > { %s1939_s21 = scalar_lea.hbm %s2382_s25, 256  ;;  %s1943_s14 = scalar_lea.hbm %s2436_s8, 512 }
 0x1e5   : > { %p1940_p12 = scmp.ne.s32.totalorder %s2382_s25, %s1939_s21  ;;  %p1944_p4 = scmp.lt.u32.totalorder %s2382_s25, %s2436_s8 }
 0x1e6   : > { %p1945_p8 = scmp.lt.u32.totalorder %s1943_s14, %s1939_s21  ;;  %p1947_p7 = scmp.lt.u32.totalorder %s1939_s21, %s2382_s25 }
 0x1e7   : > { %p1941_p2 = pnand %p1940_p12, %p2208_p6 }
 0x1e8   : > { %p1946_p3 = por %p1945_p8, %p1944_p4 }
 0x1e9   : > { %p1942_p1 = pneg %p1941_p2 }
 0x1ea   : > { %p1948_p10 = por %p1947_p7, %p1946_p3 }
 0x1ec   : > { %p1949_p13 = pnand %p1948_p10, %p1942_p1 }
 0x1ee   : > { %1952 = shalt.err (!%p1949_p13)
}
 0x1ef   : > { %s2018_s17 = smov 64   ;;  %s2019_s22 = smov 4  }
 0x1f0   : > { %1602 = dma.vmem_to_hbm [thread:$0]  (%p2208_p6), %s2384_s24, 256, %s2382_s25, %s1244_s20, %s2018_s17, %s2018_s17, %s2019_s22  }
 0x1f1 PF: > { %s2459_s13 = sld [smem:[#allocation18_spill]]  ;;  %s1293_s23 = sand.u32 1, %s1991_s30  }
 0x1f2   : > { %p2461_p5 = scmp.ge.s32.totalorder %s2003_s12, 2  ;;  %s1294_s26 = scalar_lea.sflag [#allocation4], %s1293_s23 }
 0x1f7   : > { %p2460_p0 = scmp.ne.s32.totalorder %s2459_s13, 0 }
 0x1f9   : > { %p1621_p11 = pnand %p2461_p5, %p2460_p0 }
 0x1fb   : > { %1982 = dma.done.wait (!%p1621_p11), %s1294_s26, 256  }
 0x1fc   : > { %1984 = vsyncadd (!%p1621_p11), %s1294_s26, 4294967040  ;;  %s1303_s21 = scalar_lea.sflag [#allocation12], %s1293_s23 }
 0x1fd   : > { %1986 = dma.done.wait (!%p1621_p11), %s1303_s21, 512  }
 0x1fe   : > { %1988 = vsyncadd (!%p1621_p11), %s1303_s21, 4294966784  ;;  %p28_p6 = scmp.ge.s32.totalorder %s2194_s4, 4   ;;  %s2462_s30 = smov %s1995_s10 }
 0x1ff   : > { %s2463_s10 = smov %s1999_s11  ;;  %s2464_s11 = smov %s2204_s16 }
 0x200   : > { %s2465_s12 = smov %s2194_s4  ;;  %30 = sbr.rel (!%p28_p6) target bundleno = 11 (0xb), region = 135 }
 0x207   :  { %1308 = vsyncpa [#allocation3], 1 }
 0x208   :  { %1310 = vsyncpa [#allocation3 + $0x1], 1 }
 0x209   :  { %1311 = vsyncpa [#allocation6], 1 }
 0x20a   :  { %1312 = vsyncpa [#allocation9], 1 }
 0x20b   :  { %1313 = vsyncpa [#allocation4], 1 }
 0x20c   :  { %1315 = vsyncpa [#allocation4 + $0x1], 1 }
 0x20d   :  { %1316 = vsyncpa [#allocation12], 1 }
 0x20e   :  { %1318 = vsyncpa [#allocation12 + $0x1], 1 }

</bundles_post_ra>
